<compile_context>
chip_gen: v7x
topology: tpu7x:2x2x1
jax: 0.10.0
libtpu: 0.0.40
codegen_flags: <defaults>
</compile_context>

<pallas_src>
import functools

import jax
import jax.numpy as jnp
from jax.experimental import pallas as pl
from jax.experimental.pallas import tpu as pltpu


def _keypoint_loss_kernel(data_ref, inv_area_ref, inv_sig_ref, out_ref, acc_ref,
                          *, inv_total):
    """data_ref: (3, K, TN); inv_area_ref: (1, TN); inv_sig_ref: (K, 1);
    out_ref: (1, 1); acc_ref: (K, TN) f32 scratch (resident across grid steps)."""
    step = pl.program_id(0)

    @pl.when(step == 0)
    def _init():
        acc_ref[...] = jnp.zeros_like(acc_ref)

    dx = data_ref[0].astype(jnp.float32)       # (K, TN)  pred_x - gt_x
    dy = data_ref[1].astype(jnp.float32)       # (K, TN)  pred_y - gt_y
    wmask = data_ref[2].astype(jnp.float32)    # (K, TN)  mask * K/(count+1e-9)

    inv_area = inv_area_ref[...]               # (1, TN)  1 / (area + 1e-9)
    inv_sig = inv_sig_ref[...]                 # (K, 1)   1 / (8 * sigma^2)

    d = dx * dx + dy * dy                      # (K, TN)
    e = d * inv_sig * inv_area                 # == d / ((2*sig)^2 * (area+1e-9) * 2)
    # Pure elementwise accumulate (VPU + EUP); padded lanes contribute exactly 0.
    acc_ref[...] += (1.0 - jnp.exp(-e)) * wmask

    @pl.when(step == pl.num_programs(0) - 1)
    def _finalize():
        # Single cross-lane/sublane reduce + scale by 1/(N*K), once per call.
        out_ref[...] = jnp.sum(acc_ref[...], keepdims=True) * inv_total


def keypoint_loss(pred_kpts, gt_kpts, kpt_mask, area, sigmas, *, lane_tile=8192):
    """pred_kpts, gt_kpts: (N, K, 2); kpt_mask: (N, K); area: (N, 1) or (N,); sigmas: (K,)."""
    n, k, _ = pred_kpts.shape
    slab_dt = pred_kpts.dtype  # keep caller precision for the big DMA
    f32 = jnp.float32

    # --- host-side prep (fuses with the slab build; touches each element once) ---
    mask_f = kpt_mask.astype(f32)                                   # (N, K)
    count = jnp.sum(kpt_mask != 0, axis=1).astype(f32)              # (N,)
    klf = k / (count + 1e-9)                                        # (N,) K/(count+1e-9)
    wmask = mask_f * klf[:, None]                                   # (N, K); rows with count==0 stay 0
    dx = pred_kpts[..., 0].astype(f32) - gt_kpts[..., 0].astype(f32)
    dy = pred_kpts[..., 1].astype(f32) - gt_kpts[..., 1].astype(f32)

    # Fused lane-dense slab: (3 planes, K keypoints on sublanes, N instances on lanes).
    data = jnp.stack([dx, dy, wmask], axis=0).astype(slab_dt)       # (3, N, K)
    data = jnp.transpose(data, (0, 2, 1))                           # (3, K, N)

    inv_area = (1.0 / (area.astype(f32).reshape(n) + 1e-9)).reshape(1, n)   # (1, N)
    inv_sig = (1.0 / (8.0 * sigmas.astype(f32) ** 2)).reshape(k, 1)         # (K, 1)

    # --- tiling: single step when N is small, large lane tiles otherwise ---
    n_pad_min = ((n + 127) // 128) * 128
    lane_tile = max(128, min(int(lane_tile), n_pad_min))
    lane_tile = ((lane_tile + 127) // 128) * 128
    n_pad = ((n + lane_tile - 1) // lane_tile) * lane_tile
    if n_pad != n:
        # Zero padding: wmask=0 and dx=dy=0 -> padded lanes contribute exactly 0.
        data = jnp.pad(data, ((0, 0), (0, 0), (0, n_pad - n)))
        inv_area = jnp.pad(inv_area, ((0, 0), (0, n_pad - n)))
    grid = (n_pad // lane_tile,)

    kernel = functools.partial(_keypoint_loss_kernel, inv_total=1.0 / float(n * k))

    out = pl.pallas_call(
        kernel,
        out_shape=jax.ShapeDtypeStruct((1, 1), jnp.float32),
        grid_spec=pltpu.PrefetchScalarGridSpec(
            num_scalar_prefetch=0,
            grid=grid,
            in_specs=[
                pl.BlockSpec((3, k, lane_tile), lambda i: (0, 0, i)),   # fused dx/dy/wmask slab
                pl.BlockSpec((1, lane_tile), lambda i: (0, i)),         # 1/(area+1e-9)
                pl.BlockSpec((k, 1), lambda i: (0, 0)),                 # 1/(8*sigma^2) (resident)
            ],
            out_specs=pl.BlockSpec((1, 1), lambda i: (0, 0)),           # resident scalar output
            scratch_shapes=[pltpu.VMEM((k, lane_tile), jnp.float32)],   # wide f32 accumulator
        ),
        compiler_params=pltpu.CompilerParams(
            # Reduction over the N-tile axis -> "arbitrary" (scratch carried across steps).
            dimension_semantics=("arbitrary",),
            vmem_limit_bytes=32 * 1024 * 1024,
        ),
    )(data, inv_area, inv_sig)
    return out[0, 0]


def keypoint_loss_ref(pred_kpts, gt_kpts, kpt_mask, area, sigmas):
    """Pure-JAX reference mirroring the PyTorch forward."""
    d = (pred_kpts[..., 0] - gt_kpts[..., 0]) ** 2 + (pred_kpts[..., 1] - gt_kpts[..., 1]) ** 2
    kpt_loss_factor = kpt_mask.shape[1] / (jnp.sum(kpt_mask != 0, axis=1) + 1e-9)
    e = d / ((2 * sigmas) ** 2 * (area + 1e-9) * 2)
    return jnp.mean(kpt_loss_factor.reshape(-1, 1) * ((1 - jnp.exp(-e)) * kpt_mask))


if __name__ == "__main__":
    def make_inputs(key, n, k):
        k1, k2, k3, k4 = jax.random.split(key, 4)
        pred = jax.random.normal(k1, (n, k, 2), dtype=jnp.float32) * 4.0
        gt = jax.random.normal(k2, (n, k, 2), dtype=jnp.float32) * 4.0
        mask = (jax.random.uniform(k3, (n, k)) > 0.3).astype(jnp.float32)
        area = jax.random.uniform(k4, (n, 1), minval=8.0, maxval=64.0)
        return pred, gt, mask, area

    K = 17  # COCO-style keypoints
    sigmas = jnp.ones((K,), dtype=jnp.float32) / K

    # Small case: single 128-wide step (grid of 1).
    pred, gt, mask, area = make_inputs(jax.random.PRNGKey(0), 8, K)
    loss = keypoint_loss(pred, gt, mask, area, sigmas)
    jax.block_until_ready(loss)
    ref = keypoint_loss_ref(pred, gt, mask, area, sigmas)
    assert jnp.allclose(loss, ref, rtol=5e-5, atol=1e-6), (loss, ref)

    # Medium case: default tiling gives one 768-wide step (no over-padding).
    pred, gt, mask, area = make_inputs(jax.random.PRNGKey(1), 700, K)
    loss = keypoint_loss(pred, gt, mask, area, sigmas)
    jax.block_until_ready(loss)
    ref = keypoint_loss_ref(pred, gt, mask, area, sigmas)
    assert jnp.allclose(loss, ref, rtol=5e-5, atol=1e-6), (loss, ref)

    # Multi-step grid: exercises the resident scratch accumulator across tiles.
    loss = keypoint_loss(pred, gt, mask, area, sigmas, lane_tile=256)
    jax.block_until_ready(loss)
    assert jnp.allclose(loss, ref, rtol=5e-5, atol=1e-6), (loss, ref)

    print("KERNEL_OK")
</pallas_src>

<mosaic_0001>
module attributes {stable_mosaic.version = 11 : i64} {
  func.func @_keypoint_loss_kernel(%arg0: i32, %arg1: memref<3x17x128xf32, #tpu.memory_space<vmem>>, %arg2: memref<1x128xf32, #tpu.memory_space<vmem>>, %arg3: memref<17x1xf32, #tpu.memory_space<vmem>>, %arg4: memref<1x1xf32, #tpu.memory_space<vmem>>, %arg5: memref<17x128xf32, #tpu.memory_space<vmem>>) attributes {dimension_semantics = [#tpu.dimension_semantics<arbitrary>], iteration_bounds = array<i64: 1>, scalar_prefetch = 0 : i64, scratch_operands = 1 : i64, tpu.core_type = #tpu.core_type<tc>, window_params = [{transform_indices = @transform_0, window_bounds = array<i64: 3, 17, 128>}, {transform_indices = @transform_1, window_bounds = array<i64: 1, 128>}, {pipeline_mode = #tpu.pipeline_mode<synchronous>, transform_indices = @transform_2, window_bounds = array<i64: 17, 1>}, {pipeline_mode = #tpu.pipeline_mode<synchronous>, transform_indices = @transform_3, window_bounds = array<i64: 1, 1>}]} {
    %c0_i32 = arith.constant 0 : i32
    %0 = arith.cmpi eq, %arg0, %c0_i32 : i32
    %1 = arith.extui %0 : i1 to i32
    %c0_i32_0 = arith.constant 0 : i32
    %2 = arith.cmpi ne, %1, %c0_i32_0 : i32
    scf.if %2 {
      %cst_18 = arith.constant 0.000000e+00 : f32
      %30 = vector.broadcast %cst_18 : f32 to vector<17x128xf32>
      %c0_19 = arith.constant 0 : index
      %c0_20 = arith.constant 0 : index
      %31 = vector.load %arg5[%c0_19, %c0_20] : memref<17x128xf32, #tpu.memory_space<vmem>>, vector<17x128xf32>
      tpu.vector_store %arg5[%c0_19, %c0_20], %30 {strides = array<i32>} : memref<17x128xf32, #tpu.memory_space<vmem>>, vector<17x128xf32>,
    } else {
    }
    %c0 = arith.constant 0 : index
    %c0_1 = arith.constant 0 : index
    %c0_2 = arith.constant 0 : index
    %3 = vector.load %arg1[%c0, %c0_1, %c0_2] : memref<3x17x128xf32, #tpu.memory_space<vmem>>, vector<1x17x128xf32>
    %4 = vector.shape_cast %3 : vector<1x17x128xf32> to vector<17x128xf32>
    %c1 = arith.constant 1 : index
    %c0_3 = arith.constant 0 : index
    %c0_4 = arith.constant 0 : index
    %5 = vector.load %arg1[%c1, %c0_3, %c0_4] : memref<3x17x128xf32, #tpu.memory_space<vmem>>, vector<1x17x128xf32>
    %6 = vector.shape_cast %5 : vector<1x17x128xf32> to vector<17x128xf32>
    %c2 = arith.constant 2 : index
    %c0_5 = arith.constant 0 : index
    %c0_6 = arith.constant 0 : index
    %7 = vector.load %arg1[%c2, %c0_5, %c0_6] : memref<3x17x128xf32, #tpu.memory_space<vmem>>, vector<1x17x128xf32>
    %8 = vector.shape_cast %7 : vector<1x17x128xf32> to vector<17x128xf32>
    %c0_7 = arith.constant 0 : index
    %c0_8 = arith.constant 0 : index
    %9 = vector.load %arg2[%c0_7, %c0_8] : memref<1x128xf32, #tpu.memory_space<vmem>>, vector<1x128xf32>
    %c0_9 = arith.constant 0 : index
    %c0_10 = arith.constant 0 : index
    %10 = vector.load %arg3[%c0_9, %c0_10] : memref<17x1xf32, #tpu.memory_space<vmem>>, vector<17x1xf32>
    %11 = arith.mulf %4, %4 : vector<17x128xf32>
    %12 = arith.mulf %6, %6 : vector<17x128xf32>
    %13 = arith.addf %11, %12 : vector<17x128xf32>
    %14 = vector.broadcast %10 : vector<17x1xf32> to vector<17x128xf32>
    %15 = arith.mulf %13, %14 : vector<17x128xf32>
    %16 = vector.broadcast %9 : vector<1x128xf32> to vector<17x128xf32>
    %17 = arith.mulf %15, %16 : vector<17x128xf32>
    %c0_11 = arith.constant 0 : index
    %c0_12 = arith.constant 0 : index
    %18 = vector.load %arg5[%c0_11, %c0_12] : memref<17x128xf32, #tpu.memory_space<vmem>>, vector<17x128xf32>
    %cst = arith.constant 0.000000e+00 : f32
    %19 = vector.broadcast %cst : f32 to vector<17x128xf32>
    %20 = arith.subf %19, %17 : vector<17x128xf32>
    %21 = math.exp %20 : vector<17x128xf32>
    %cst_13 = arith.constant 1.000000e+00 : f32
    %22 = vector.broadcast %cst_13 : f32 to vector<17x128xf32>
    %23 = arith.subf %22, %21 : vector<17x128xf32>
    %24 = arith.mulf %23, %8 : vector<17x128xf32>
    %25 = arith.addf %18, %24 : vector<17x128xf32>
    %c0_14 = arith.constant 0 : index
    %c0_15 = arith.constant 0 : index
    %26 = vector.load %arg5[%c0_14, %c0_15] : memref<17x128xf32, #tpu.memory_space<vmem>>, vector<17x128xf32>
    tpu.vector_store %arg5[%c0_14, %c0_15], %25 {strides = array<i32>} : memref<17x128xf32, #tpu.memory_space<vmem>>, vector<17x128xf32>,
    %c0_i32_16 = arith.constant 0 : i32
    %27 = arith.cmpi eq, %arg0, %c0_i32_16 : i32
    %28 = arith.extui %27 : i1 to i32
    %c0_i32_17 = arith.constant 0 : i32
    %29 = arith.cmpi ne, %28, %c0_i32_17 : i32
    scf.if %29 {
      %c0_18 = arith.constant 0 : index
      %c0_19 = arith.constant 0 : index
      %30 = vector.load %arg5[%c0_18, %c0_19] : memref<17x128xf32, #tpu.memory_space<vmem>>, vector<17x128xf32>
      %31 = vector.shape_cast %30 : vector<17x128xf32> to vector<1x17x128xf32>
      %cst_20 = arith.constant dense<0.000000e+00> : vector<1xf32>
      %32 = vector.multi_reduction <add>, %31, %cst_20 [1, 2] : vector<1x17x128xf32> to vector<1xf32>
      %33 = vector.shape_cast %32 : vector<1xf32> to vector<1x1x1xf32>
      %34 = vector.extract %33[0, 0, 0] : f32 from vector<1x1x1xf32>
      %35 = vector.broadcast %34 : f32 to vector<1x1xf32>
      %cst_21 = arith.constant 0.0073529412 : f32
      %36 = vector.broadcast %cst_21 : f32 to vector<1x1xf32>
      %37 = arith.mulf %35, %36 : vector<1x1xf32>
      %c0_22 = arith.constant 0 : index
      %c0_23 = arith.constant 0 : index
      %38 = vector.load %arg4[%c0_22, %c0_23] : memref<1x1xf32, #tpu.memory_space<vmem>>, vector<1x1xf32>
      tpu.vector_store %arg4[%c0_22, %c0_23], %37 {strides = array<i32>} : memref<1x1xf32, #tpu.memory_space<vmem>>, vector<1x1xf32>,
    } else {
    }
    return
  }
  func.func @transform_0(%arg0: i32) -> (i32, i32, i32) {
    %c0_i32 = arith.constant 0 : i32
    %c0_i32_0 = arith.constant 0 : i32
    %c0_i32_1 = arith.constant 0 : i32
    return %c0_i32, %c0_i32_0, %arg0 : i32, i32, i32
  }
  func.func @transform_1(%arg0: i32) -> (i32, i32) {
    %c0_i32 = arith.constant 0 : i32
    %c0_i32_0 = arith.constant 0 : i32
    return %c0_i32, %arg0 : i32, i32
  }
  func.func @transform_2(%arg0: i32) -> (i32, i32) {
    %c0_i32 = arith.constant 0 : i32
    %c0_i32_0 = arith.constant 0 : i32
    %c0_i32_1 = arith.constant 0 : i32
    return %c0_i32, %c0_i32_0 : i32, i32
  }
  func.func @transform_3(%arg0: i32) -> (i32, i32) {
    %c0_i32 = arith.constant 0 : i32
    %c0_i32_0 = arith.constant 0 : i32
    %c0_i32_1 = arith.constant 0 : i32
    return %c0_i32, %c0_i32_0 : i32, i32
  }
}

</mosaic_0001>

<bundles_post_ra>
// kernel: tpu_custom_call.1
= control target key start
LH: loop header
LB: loop body
LE: loop exit
PB: predicated region body
PF: predicated region fallthrough
CT: control target
= control target key end

     0   :  { %v178_v2 = vmov 0   ;;  %v179_v3 = vmov 0.0   ;;  %s252_s0 = inlined_call_operand.vmem [shape: f32[3,17,128], index: 0, kind: input, shape index: {}]   ;;  %s253_s1 = inlined_call_operand.vmem [shape: f32[1,128], index: 1, kind: input, shape index: {}]   ;;  %s254_s2 = inlined_call_operand.vmem [shape: f32[17,1], index: 2, kind: input, shape index: {}]   ;;  %s255_s3 = inlined_call_operand.hbm [shape: f32[1,1], index: 3, kind: output, shape index: {}]  }
   0x1   :  { %v34_v0 = vld [vmem:[%s254_s2] sm:$0xff]  ;;  %v36_v1 = vld [vmem:[%s254_s2 + $0x10] sm:$0x1]  ;;  %146 = vset.pattern.permute.xlu0 %v178_v2  ;;  %147 = vset.pattern.permute.xlu1 %v178_v2  ;;  %21 = vst [vmem:[#allocation2 + $0x10] sm:$0x1] %v179_v3  ;;  %v35_v4 = vld [vmem:[%s254_s2 + $0x8] sm:$0xff] }
   0x2   :  { %48 = vperm.xlu0 %146, %v34_v0   ;;  %58 = vperm.xlu1 %147, %v36_v1  }
   0x3   :  { %8 = vsyncpa [#allocation4], 0  ;;  %v22_v5 = vld [vmem:[%s252_s0] sm:$0xff]  ;;  %v134_v6 = vld [vmem:[%s252_s0 + $0x18] sm:$0xff]  ;;  %vm104_vm0 = vcmask 1040384   ;;  %vm118_vm1 = vcmask 0  }
   0x4   :  { %v24_v7 = vld [vmem:[%s252_s0 + $0x10] sm:$0x1]  ;;  %v136_v8 = vld [vmem:[%s252_s0 + $0x28] sm:$0x1]  ;;  %v37_v9 = vmul.f32 %v22_v5, %v22_v5  ;;  %v40_v10 = vmul.f32 %v134_v6, %v134_v6  ;;  %v135_v14 = vld [vmem:[%s252_s0 + $0x20] sm:$0xff] }
   0x5   :  { %v39_v11 = vmul.f32 %v24_v7, %v24_v7  ;;  %v42_v12 = vmul.f32 %v136_v8, %v136_v8  ;;  %v23_v13 = vld [vmem:[%s252_s0 + $0x8] sm:$0xff]  ;;  %v41_v17 = vmul.f32 %v135_v14, %v135_v14  ;;  %v140_v20 = vld [vmem:[%s253_s1] ss:$0 sm:$0xff]  ;;  %v137_v37 = vld [vmem:[%s252_s0 + $0x30] sm:$0xff] }
   0x6   :  { %53 = vperm.xlu0 %146, %v35_v4   ;;  %v43_v15 = vadd.f32 %v40_v10, %v37_v9  ;;  %v38_v16 = vmul.f32 %v23_v13, %v23_v13  ;;  %v139_v40 = vld [vmem:[%s252_s0 + $0x40] sm:$0x1]  ;;  %v138_v45 = vld [vmem:[%s252_s0 + $0x38] sm:$0xff]  ;;  %s180_s0 = smov [#allocation3]  }
   0x7   :  { %v45_v18 = vadd.f32 %v42_v12, %v39_v11  ;;  %s126_s9 = sshll.u32 %s180_s0, 4  ;;  %s127_s9 = int_to_ptr.vmem [resolvable:$true] %s126_s9 }
   0x8   :  { %v44_v23 = vadd.f32 %v41_v17, %v38_v16  ;;  %v75_v43 = vld [vmem:[#allocation2 + $0x10] sm:$0x1]  ;;  %s154_s11 = scalar_lea.vmem %s127_s9, 16  ;;  %s158_s12 = scalar_lea.vmem %s127_s9, 32 }
   0x9   :  { %p155_p0 = scmp.ne.s32.totalorder %s127_s9, %s154_s11  ;;  %p159_p1 = scmp.lt.s32.totalorder %s127_s9, %s127_s9 }
   0xa   :  { %p160_p2 = scmp.lt.s32.totalorder %s158_s12, %s154_s11 }
   0xc   :  { %p161_p3 = por %p160_p2, %p159_p1 }
   0xe   :  { %p162_p4 = pnand %p161_p3, %p155_p0 }
  0x81   :  { %v49_v19 = vpop.permute.xlu0 %48  ;;  %v59_v21 = vpop.permute.xlu1 %58 }
  0x82   :  { %v61_v22 = vmul.f32 %v49_v19, %v43_v15  ;;  %v63_v24 = vmul.f32 %v59_v21, %v45_v18 }
  0x84   :  { %v70_v25 = vmul.f32 %v140_v20, %v61_v22  ;;  %v72_v26 = vmul.f32 %v140_v20, %v63_v24 }
  0x85   :  { %v54_v27 = vpop.permute.xlu0 %53 }
  0x86   :  { %v76_v28 = vsub.f32 0.0, %v70_v25  ;;  %v62_v29 = vmul.f32 %v54_v27, %v44_v23  ;;  %v78_v30 = vsub.f32 0.0, %v72_v26 }
  0x88   :  { %v79_v31 = vmul.f32 1.442695, %v76_v28  ;;  %v71_v32 = vmul.f32 %v140_v20, %v62_v29  ;;  %v83_v33 = vmul.f32 1.442695, %v78_v30 }
  0x8a   :  { %148 = vpow2.f32 %v79_v31  ;;  %v77_v34 = vsub.f32 0.0, %v71_v32 }
  0x8b   :  { %150 = vpow2.f32 %v83_v33 }
  0x8c   :  { %v81_v35 = vmul.f32 1.442695, %v77_v34 }
  0x8e   :  { %152 = vpow2.f32 %v81_v35 }
  0x94   :  { %v149_v36 = vpop.eup %148 }
  0x95   :  { %v151_v38 = vpop.eup %150  ;;  %v85_v39 = vsub.f32 1.0, %v149_v36 }
  0x96   :  { %v87_v41 = vsub.f32 1.0, %v151_v38 }
  0x97   :  { %v88_v42 = vmul.f32 %v137_v37, %v85_v39 }
  0x98   :  { %v153_v44 = vpop.eup %152  ;;  %v90_v46 = vmul.f32 %v139_v40, %v87_v41 }
  0x99   :  { %v86_v47 = vsub.f32 1.0, %v153_v44 }
  0x9a   :  { %v93_v48 = vadd.f32 %v90_v46, %v75_v43 }
  0x9b   :  { %v89_v49 = vmul.f32 %v138_v45, %v86_v47 }
  0x9c   :  { %96 = vst [vmem:[#allocation2 + $0x10] sm:$0x1] %v93_v48 }
  0x9d   :  { %v103_v51 = vadd.f32 %v89_v49, %v88_v42 }
  0xa3   :  { %v102_v50 = vld [vmem:[#allocation2 + $0x10] sm:$0x1] }
  0xa4   :  { %v105_v52 = vsel %vm104_vm0, %v102_v50, 0.0 }
  0xa5   :  { %v106_v53 = vadd.f32 %v105_v52, %v103_v51 }
  0xa7   :  { %107 = vadd.xlane.f32.xlu1 %v106_v53 }
 0x134   :  { %v108_v54 = vpop.xlane.xlu1 %107 }
 0x135   :  { %v109_v55 = vrot.slane %v108_v54, 4 }
 0x137   :  { %v110_v56 = vadd.f32 %v109_v55, %v108_v54 }
 0x139   :  { %v111_v57 = vrot.slane %v110_v56, 2 }
 0x13b   :  { %v112_v58 = vadd.f32 %v111_v57, %v110_v56 }
 0x13d   :  { %v113_v59 = vrot.slane %v112_v58, 1 }
 0x13f   :  { %v114_v60 = vadd.f32 %v113_v59, %v112_v58 }
 0x141   :  { %141 = vpush %v114_v60 }
 0x172   :  { %s142_s10 = spop %141 }
 0x173   :  { %v116_v61 = vstv %s142_s10 }
 0x174   :  { %v117_v62 = vmul.f32 0.007352941, %v116_v61 }
 0x176   :  { %119 = vst.msk [vmem:[#allocation3] sm:$0x1] %vm118_vm1, %v117_v62 }
 0x177   :  { %165 = shalt.err (!%p162_p4)
}
 0x178   :  { %s166_s15 = scalar_lea.hbm %s255_s3, 16 }
 0x179   :  { %p167_p5 = scmp.ne.s32.totalorder %s255_s3, %s166_s15  ;;  %p170_p6 = scmp.lt.u32.totalorder %s166_s15, %s255_s3 }
 0x17b   :  { %p172_p7 = pnand %p170_p6, %p167_p5 }
 0x17d   :  { %175 = shalt.err (!%p172_p7)
}
 0x17e   :  { %129 = dma.vmem_to_hbm [thread:$0]  %s127_s9, 16, %s255_s3, [#allocation4]  }
 0x17f   :  { %176 = dma.done.wait [#allocation4], 16  }
 0x180   :  { %177 = vsyncadd [#allocation4], 4294967280 }
 0x181   :  { %133 = vsyncpa [#allocation4], 1 }

</bundles_post_ra>
